<compile_context>
chip_gen: v7x
topology: tpu7x:2x2x1
jax: 0.10.0
libtpu: 0.0.40
codegen_flags: <defaults>
</compile_context>

<pallas_src>
import functools

import numpy as np
import jax
import jax.numpy as jnp
from jax.experimental import pallas as pl
from jax.experimental.pallas import tpu as pltpu

NEG_SLOPE = 0.2
BN_EPS = 1e-5
LANES = 128


# ---------------------------------------------------------------------------
# Pallas kernel: one (batch, channel-block, row-block) tile of the output
# ---------------------------------------------------------------------------
def _dwconv_kernel(x_ref, w_ref, b_ref, o_ref, *, rb):
    # x_ref : (Hp, Wp, CB)  zero-padded input image (resident across row blocks)
    # w_ref : (9, CB)       depthwise taps with the BN scale already folded in
    # b_ref : (1, CB)       folded BN bias
    # o_ref : (rb, Wo, CB)  one row block of the output
    Wo = o_ref.shape[1]
    r0 = pl.multiple_of(pl.program_id(2) * rb, rb)

    # One slab load per row block (rb + 2 rows including the halo).
    slab = x_ref[pl.ds(r0, rb + 2), :, :]              # (rb+2, Wp, CB)

    acc = None
    for kh in range(3):
        rows = slab[kh:kh + rb]                         # leading-axis slice (cheap)
        for kw in range(3):
            tap = rows[:, kw:kw + Wo, :]                # W shift handled off the VALU slot
            term = tap * w_ref[kh * 3 + kw]             # (CB,) lane broadcast, VPU FMA
            acc = term if acc is None else acc + term

    out = acc + b_ref[0]                                # BN scale folded into taps: bias only
    o_ref[...] = jnp.maximum(out, NEG_SLOPE * out)      # LeakyReLU(0.2)


def _pick_row_block(h):
    for rb in (32, 16, 8):
        if h % rb == 0:
            return rb
    return 8


# ---------------------------------------------------------------------------
# Wrapper (PyTorch-style NCHW in / NCHW out)
# ---------------------------------------------------------------------------
def dwconv_pallas(x_nchw, weight, gamma, beta, mean, var, *, stride=1, eps=BN_EPS):
    N, C, H, W = x_nchw.shape
    cout, cpg, kh_, kw_ = weight.shape
    if (kh_, kw_) != (3, 3):
        raise NotImplementedError("only 3x3 kernels are supported")
    if cout != C or cpg != 1:
        # TODO(synk): general grouped conv (dw_channels != out_channels) not implemented.
        raise NotImplementedError("only the depthwise case dw_channels == out_channels")

    # Kernel computes the stride-1 output (Ho1=H, Wo1=W); stride>1 subsamples it.
    Ho1, Wo1 = H, W

    rb = _pick_row_block(Ho1)
    Ho_pad = -(-Ho1 // rb) * rb
    nrb = Ho_pad // rb

    CP = -(-C // LANES) * LANES            # lane-dense channels (multiple of 128)
    ncb = CP // LANES

    f32 = jnp.float32
    # Fold inference-mode BatchNorm: scale into the taps, bias stays separate.
    inv_std = (gamma / jnp.sqrt(var + eps)).astype(f32)
    w9c = jnp.transpose(weight[:, 0], (1, 2, 0)).reshape(9, C).astype(f32)
    w9c = w9c * inv_std[None, :]
    bias = (beta.astype(f32) - mean.astype(f32) * inv_std).reshape(1, C)
    if CP != C:
        w9c = jnp.pad(w9c, ((0, 0), (0, CP - C)))
        bias = jnp.pad(bias, ((0, 0), (0, CP - C)))

    # NCHW -> NHWC, spatial zero padding (padding=1) + bottom pad up to the row-block grid.
    x_nhwc = jnp.transpose(x_nchw, (0, 2, 3, 1)).astype(f32)
    Hp = Ho_pad + 2
    Wp = W + 2
    x_pad = jnp.pad(x_nhwc, ((0, 0), (1, Hp - 1 - H), (1, 1), (0, CP - C)))

    kernel = functools.partial(_dwconv_kernel, rb=rb)

    # VMEM budget from the real (double-buffered) block footprint, with headroom.
    block_bytes = 4 * (2 * Hp * Wp * LANES + 2 * rb * Wo1 * LANES + 2 * 10 * LANES)
    try:
        vmem_cap = pltpu.get_tpu_info().vmem_capacity_bytes
    except Exception:
        vmem_cap = 64 * 2 ** 20
    vmem_limit = int(min(max(block_bytes + (8 << 20), 32 << 20), vmem_cap - (8 << 20)))

    flops = N * Ho_pad * Wo1 * CP * (2 * 9 + 3)
    bytes_accessed = 4 * (x_pad.size + w9c.size + bias.size + N * Ho_pad * Wo1 * CP)

    out_nhwc = pl.pallas_call(
        kernel,
        out_shape=jax.ShapeDtypeStruct((N, Ho_pad, Wo1, CP), f32),
        grid=(N, ncb, nrb),
        in_specs=[
            pl.BlockSpec((None, Hp, Wp, LANES), lambda n, c, r: (n, 0, 0, c)),
            pl.BlockSpec((9, LANES), lambda n, c, r: (0, c)),
            pl.BlockSpec((1, LANES), lambda n, c, r: (0, c)),
        ],
        out_specs=pl.BlockSpec((None, rb, Wo1, LANES), lambda n, c, r: (n, r, 0, c)),
        compiler_params=pltpu.CompilerParams(
            dimension_semantics=("parallel", "parallel", "parallel"),
            vmem_limit_bytes=vmem_limit),
        cost_estimate=pl.CostEstimate(flops=flops, transcendentals=0,
                                      bytes_accessed=bytes_accessed),
    )(x_pad, w9c, bias)

    out = out_nhwc[:, :Ho1, :, :C]                     # drop row/channel padding
    out = jnp.transpose(out, (0, 3, 1, 2))             # back to NCHW (layout plumbing)
    if stride != 1:
        out = out[:, :, ::stride, ::stride]
    return out


# ---------------------------------------------------------------------------
# Pure-JAX reference (same semantics) for the sanity check
# ---------------------------------------------------------------------------
def reference_forward(x_nchw, weight, gamma, beta, mean, var, *, stride=1, eps=BN_EPS):
    C = x_nchw.shape[1]
    y = jax.lax.conv_general_dilated(
        x_nchw, weight,
        window_strides=(stride, stride),
        padding=((1, 1), (1, 1)),
        dimension_numbers=("NCHW", "OIHW", "NCHW"),
        feature_group_count=C,
        precision=jax.lax.Precision.HIGHEST)
    s = gamma / jnp.sqrt(var + eps)
    b = beta - mean * s
    y = y * s[None, :, None, None] + b[None, :, None, None]
    return jnp.where(y >= 0, y, NEG_SLOPE * y)


# ---------------------------------------------------------------------------
if __name__ == "__main__":
    # Small shapes; C=64 exercises the lane-padding path, H=20 exercises the
    # row-block padding path (Ho_pad=24, 3 row blocks).
    N, C, H, W = 2, 64, 20, 20
    stride = 1

    key = jax.random.PRNGKey(0)
    kx, kw = jax.random.split(key)
    x = jax.random.normal(kx, (N, C, H, W), jnp.float32)
    weight = jax.random.normal(kw, (C, 1, 3, 3), jnp.float32) * 0.3

    gamma = (1.0 + 0.01 * jnp.arange(C)).astype(jnp.float32)
    beta = (0.02 * jnp.arange(C) - 0.5).astype(jnp.float32)
    mean = (0.01 * jnp.arange(C) - 0.3).astype(jnp.float32)
    var = (1.0 + 0.05 * jnp.arange(C)).astype(jnp.float32)

    out = jax.block_until_ready(
        dwconv_pallas(x, weight, gamma, beta, mean, var, stride=stride))
    ref = jax.block_until_ready(
        reference_forward(x, weight, gamma, beta, mean, var, stride=stride))

    assert out.shape == ref.shape == (N, C, H, W)
    np.testing.assert_allclose(np.asarray(out), np.asarray(ref), rtol=1e-4, atol=1e-4)
    print("KERNEL_OK")
</pallas_src>

<mosaic_0001>
module attributes {stable_mosaic.version = 11 : i64} {
  func.func @_dwconv_kernel(%arg0: i32, %arg1: i32, %arg2: i32, %arg3: memref<1x26x22x128xf32, #tpu.memory_space<vmem>>, %arg4: memref<9x128xf32, #tpu.memory_space<vmem>>, %arg5: memref<1x128xf32, #tpu.memory_space<vmem>>, %arg6: memref<1x8x20x128xf32, #tpu.memory_space<vmem>>) attributes {dimension_semantics = [#tpu.dimension_semantics<parallel>, #tpu.dimension_semantics<parallel>, #tpu.dimension_semantics<parallel>], iteration_bounds = array<i64: 2, 1, 3>, scalar_prefetch = 0 : i64, scratch_operands = 0 : i64, tpu.core_type = #tpu.core_type<tc>, window_params = [{transform_indices = @transform_0, window_bounds = array<i64: 1, 26, 22, 128>}, {transform_indices = @transform_1, window_bounds = array<i64: 9, 128>}, {transform_indices = @transform_2, window_bounds = array<i64: 1, 128>}, {transform_indices = @transform_3, window_bounds = array<i64: 1, 8, 20, 128>}]} {
    %c8_i32 = arith.constant 8 : i32
    %0 = arith.muli %arg2, %c8_i32 : i32
    %1 = tpu.assume_multiple %0, 8 : i32
    %c0 = arith.constant 0 : index
    %2 = arith.index_cast %1 : i32 to index
    %c0_0 = arith.constant 0 : index
    %c0_1 = arith.constant 0 : index
    %3 = vector.load %arg3[%c0, %2, %c0_0, %c0_1] : memref<1x26x22x128xf32, #tpu.memory_space<vmem>>, vector<1x10x22x128xf32>
    %4 = vector.shape_cast %3 : vector<1x10x22x128xf32> to vector<10x22x128xf32>
    %5 = vector.extract_strided_slice %4 {offsets = [0, 0, 0], sizes = [8, 22, 128], strides = [1, 1, 1]} : vector<10x22x128xf32> to vector<8x22x128xf32>
    %6 = vector.extract_strided_slice %5 {offsets = [0, 0, 0], sizes = [8, 20, 128], strides = [1, 1, 1]} : vector<8x22x128xf32> to vector<8x20x128xf32>
    %c0_2 = arith.constant 0 : index
    %c0_3 = arith.constant 0 : index
    %7 = vector.load %arg4[%c0_2, %c0_3] : memref<9x128xf32, #tpu.memory_space<vmem>>, vector<1x128xf32>
    %8 = vector.shape_cast %7 : vector<1x128xf32> to vector<128xf32>
    %9 = vector.shape_cast %8 : vector<128xf32> to vector<1x1x128xf32>
    %10 = vector.broadcast %9 : vector<1x1x128xf32> to vector<8x20x128xf32>
    %11 = arith.mulf %6, %10 : vector<8x20x128xf32>
    %12 = vector.extract_strided_slice %5 {offsets = [0, 1, 0], sizes = [8, 20, 128], strides = [1, 1, 1]} : vector<8x22x128xf32> to vector<8x20x128xf32>
    %c1 = arith.constant 1 : index
    %c0_4 = arith.constant 0 : index
    %13 = vector.load %arg4[%c1, %c0_4] : memref<9x128xf32, #tpu.memory_space<vmem>>, vector<1x128xf32>
    %14 = vector.shape_cast %13 : vector<1x128xf32> to vector<128xf32>
    %15 = vector.shape_cast %14 : vector<128xf32> to vector<1x1x128xf32>
    %16 = vector.broadcast %15 : vector<1x1x128xf32> to vector<8x20x128xf32>
    %17 = arith.mulf %12, %16 : vector<8x20x128xf32>
    %18 = arith.addf %11, %17 : vector<8x20x128xf32>
    %19 = vector.extract_strided_slice %5 {offsets = [0, 2, 0], sizes = [8, 20, 128], strides = [1, 1, 1]} : vector<8x22x128xf32> to vector<8x20x128xf32>
    %c2 = arith.constant 2 : index
    %c0_5 = arith.constant 0 : index
    %20 = vector.load %arg4[%c2, %c0_5] : memref<9x128xf32, #tpu.memory_space<vmem>>, vector<1x128xf32>
    %21 = vector.shape_cast %20 : vector<1x128xf32> to vector<128xf32>
    %22 = vector.shape_cast %21 : vector<128xf32> to vector<1x1x128xf32>
    %23 = vector.broadcast %22 : vector<1x1x128xf32> to vector<8x20x128xf32>
    %24 = arith.mulf %19, %23 : vector<8x20x128xf32>
    %25 = arith.addf %18, %24 : vector<8x20x128xf32>
    %26 = vector.extract_strided_slice %4 {offsets = [1, 0, 0], sizes = [8, 22, 128], strides = [1, 1, 1]} : vector<10x22x128xf32> to vector<8x22x128xf32>
    %27 = vector.extract_strided_slice %26 {offsets = [0, 0, 0], sizes = [8, 20, 128], strides = [1, 1, 1]} : vector<8x22x128xf32> to vector<8x20x128xf32>
    %c3 = arith.constant 3 : index
    %c0_6 = arith.constant 0 : index
    %28 = vector.load %arg4[%c3, %c0_6] : memref<9x128xf32, #tpu.memory_space<vmem>>, vector<1x128xf32>
    %29 = vector.shape_cast %28 : vector<1x128xf32> to vector<128xf32>
    %30 = vector.shape_cast %29 : vector<128xf32> to vector<1x1x128xf32>
    %31 = vector.broadcast %30 : vector<1x1x128xf32> to vector<8x20x128xf32>
    %32 = arith.mulf %27, %31 : vector<8x20x128xf32>
    %33 = arith.addf %25, %32 : vector<8x20x128xf32>
    %34 = vector.extract_strided_slice %26 {offsets = [0, 1, 0], sizes = [8, 20, 128], strides = [1, 1, 1]} : vector<8x22x128xf32> to vector<8x20x128xf32>
    %c4 = arith.constant 4 : index
    %c0_7 = arith.constant 0 : index
    %35 = vector.load %arg4[%c4, %c0_7] : memref<9x128xf32, #tpu.memory_space<vmem>>, vector<1x128xf32>
    %36 = vector.shape_cast %35 : vector<1x128xf32> to vector<128xf32>
    %37 = vector.shape_cast %36 : vector<128xf32> to vector<1x1x128xf32>
    %38 = vector.broadcast %37 : vector<1x1x128xf32> to vector<8x20x128xf32>
    %39 = arith.mulf %34, %38 : vector<8x20x128xf32>
    %40 = arith.addf %33, %39 : vector<8x20x128xf32>
    %41 = vector.extract_strided_slice %26 {offsets = [0, 2, 0], sizes = [8, 20, 128], strides = [1, 1, 1]} : vector<8x22x128xf32> to vector<8x20x128xf32>
    %c5 = arith.constant 5 : index
    %c0_8 = arith.constant 0 : index
    %42 = vector.load %arg4[%c5, %c0_8] : memref<9x128xf32, #tpu.memory_space<vmem>>, vector<1x128xf32>
    %43 = vector.shape_cast %42 : vector<1x128xf32> to vector<128xf32>
    %44 = vector.shape_cast %43 : vector<128xf32> to vector<1x1x128xf32>
    %45 = vector.broadcast %44 : vector<1x1x128xf32> to vector<8x20x128xf32>
    %46 = arith.mulf %41, %45 : vector<8x20x128xf32>
    %47 = arith.addf %40, %46 : vector<8x20x128xf32>
    %48 = vector.extract_strided_slice %4 {offsets = [2, 0, 0], sizes = [8, 22, 128], strides = [1, 1, 1]} : vector<10x22x128xf32> to vector<8x22x128xf32>
    %49 = vector.extract_strided_slice %48 {offsets = [0, 0, 0], sizes = [8, 20, 128], strides = [1, 1, 1]} : vector<8x22x128xf32> to vector<8x20x128xf32>
    %c6 = arith.constant 6 : index
    %c0_9 = arith.constant 0 : index
    %50 = vector.load %arg4[%c6, %c0_9] : memref<9x128xf32, #tpu.memory_space<vmem>>, vector<1x128xf32>
    %51 = vector.shape_cast %50 : vector<1x128xf32> to vector<128xf32>
    %52 = vector.shape_cast %51 : vector<128xf32> to vector<1x1x128xf32>
    %53 = vector.broadcast %52 : vector<1x1x128xf32> to vector<8x20x128xf32>
    %54 = arith.mulf %49, %53 : vector<8x20x128xf32>
    %55 = arith.addf %47, %54 : vector<8x20x128xf32>
    %56 = vector.extract_strided_slice %48 {offsets = [0, 1, 0], sizes = [8, 20, 128], strides = [1, 1, 1]} : vector<8x22x128xf32> to vector<8x20x128xf32>
    %c7 = arith.constant 7 : index
    %c0_10 = arith.constant 0 : index
    %57 = vector.load %arg4[%c7, %c0_10] : memref<9x128xf32, #tpu.memory_space<vmem>>, vector<1x128xf32>
    %58 = vector.shape_cast %57 : vector<1x128xf32> to vector<128xf32>
    %59 = vector.shape_cast %58 : vector<128xf32> to vector<1x1x128xf32>
    %60 = vector.broadcast %59 : vector<1x1x128xf32> to vector<8x20x128xf32>
    %61 = arith.mulf %56, %60 : vector<8x20x128xf32>
    %62 = arith.addf %55, %61 : vector<8x20x128xf32>
    %63 = vector.extract_strided_slice %48 {offsets = [0, 2, 0], sizes = [8, 20, 128], strides = [1, 1, 1]} : vector<8x22x128xf32> to vector<8x20x128xf32>
    %c8 = arith.constant 8 : index
    %c0_11 = arith.constant 0 : index
    %64 = vector.load %arg4[%c8, %c0_11] : memref<9x128xf32, #tpu.memory_space<vmem>>, vector<1x128xf32>
    %65 = vector.shape_cast %64 : vector<1x128xf32> to vector<128xf32>
    %66 = vector.shape_cast %65 : vector<128xf32> to vector<1x1x128xf32>
    %67 = vector.broadcast %66 : vector<1x1x128xf32> to vector<8x20x128xf32>
    %68 = arith.mulf %63, %67 : vector<8x20x128xf32>
    %69 = arith.addf %62, %68 : vector<8x20x128xf32>
    %c0_12 = arith.constant 0 : index
    %c0_13 = arith.constant 0 : index
    %70 = vector.load %arg5[%c0_12, %c0_13] : memref<1x128xf32, #tpu.memory_space<vmem>>, vector<1x128xf32>
    %71 = vector.shape_cast %70 : vector<1x128xf32> to vector<128xf32>
    %72 = vector.shape_cast %71 : vector<128xf32> to vector<1x1x128xf32>
    %73 = vector.broadcast %72 : vector<1x1x128xf32> to vector<8x20x128xf32>
    %74 = arith.addf %69, %73 : vector<8x20x128xf32>
    %cst = arith.constant 2.000000e-01 : f32
    %75 = vector.broadcast %cst : f32 to vector<8x20x128xf32>
    %76 = arith.mulf %75, %74 : vector<8x20x128xf32>
    %77 = arith.maximumf %74, %76 : vector<8x20x128xf32>
    %c0_14 = arith.constant 0 : index
    %c0_15 = arith.constant 0 : index
    %c0_16 = arith.constant 0 : index
    %c0_17 = arith.constant 0 : index
    %78 = vector.load %arg6[%c0_14, %c0_15, %c0_16, %c0_17] : memref<1x8x20x128xf32, #tpu.memory_space<vmem>>, vector<1x8x20x128xf32>
    %79 = vector.shape_cast %78 : vector<1x8x20x128xf32> to vector<8x20x128xf32>
    %80 = vector.shape_cast %77 : vector<8x20x128xf32> to vector<1x8x20x128xf32>
    tpu.vector_store %arg6[%c0_14, %c0_15, %c0_16, %c0_17], %80 {strides = array<i32>} : memref<1x8x20x128xf32, #tpu.memory_space<vmem>>, vector<1x8x20x128xf32>,
    return
  }
  func.func @transform_0(%arg0: i32, %arg1: i32, %arg2: i32) -> (i32, i32, i32, i32) {
    %c0_i32 = arith.constant 0 : i32
    %c0_i32_0 = arith.constant 0 : i32
    %c0_i32_1 = arith.constant 0 : i32
    return %arg0, %c0_i32, %c0_i32_0, %arg1 : i32, i32, i32, i32
  }
  func.func @transform_1(%arg0: i32, %arg1: i32, %arg2: i32) -> (i32, i32) {
    %c0_i32 = arith.constant 0 : i32
    %c0_i32_0 = arith.constant 0 : i32
    return %c0_i32, %arg1 : i32, i32
  }
  func.func @transform_2(%arg0: i32, %arg1: i32, %arg2: i32) -> (i32, i32) {
    %c0_i32 = arith.constant 0 : i32
    %c0_i32_0 = arith.constant 0 : i32
    return %c0_i32, %arg1 : i32, i32
  }
  func.func @transform_3(%arg0: i32, %arg1: i32, %arg2: i32) -> (i32, i32, i32, i32) {
    %c0_i32 = arith.constant 0 : i32
    %c0_i32_0 = arith.constant 0 : i32
    return %arg0, %arg2, %c0_i32, %arg1 : i32, i32, i32, i32
  }
}

</mosaic_0001>

<bundles_post_ra>
// kernel: tpu_custom_call.1
= control target key start
LH: loop header
LB: loop body
LE: loop exit
PB: predicated region body
PF: predicated region fallthrough
CT: control target
= control target key end

     0   :  { %s1647_s12 = smov 0   ;;  %s1649_s13 = smov 0   ;;  %s2631_s0 = inlined_call_operand.vmem [shape: f32[2,26,22,128], index: 0, kind: input, shape index: {}]   ;;  %s2632_s1 = inlined_call_operand.vmem [shape: f32[9,128], index: 1, kind: input, shape index: {}]   ;;  %s2633_s2 = inlined_call_operand.vmem [shape: f32[1,128], index: 2, kind: input, shape index: {}]   ;;  %s2634_s3 = inlined_call_operand.vmem [shape: f32[2,24,20,128], index: 3, kind: output, shape index: {}]  }
   0x1   :  { %s1651_s14 = smov 0   ;;  %s1653_s15 = smov 0  }
   0x2   :  { %s1655_s16 = smov 0  }
   0x3 LB: > { %s25_s17 = sadd.s32 1, %s1617_s14  ;;  %s32_s18 = sadd.s32 1, %s1621_s15  ;;  %s1625_s16 = sphi %s1655_s16, %s13_s16   ;;  %s1621_s15 = sphi %s1653_s15, %s2639_s15   ;;  %s1617_s14 = sphi %s1651_s14, %s2638_s14   ;;  %s1613_s13 = sphi %s1649_s13, %s2637_s13   ;;  %s1609_s12 = sphi %s1647_s12, %s2636_s12  }
   0x4   : > { %p26_p0 = scmp.ge.s32.totalorder %s25_s17, 3  ;;  %p1516_p1 = scmp.ge.s32.totalorder %s1625_s16, 1 }
   0x5   : > { %p182_p2 = scmp.lt.s32.totalorder %s1625_s16, 7 }
   0x6   : > { %s2641_s17 = smov (%p26_p0, %s25_s17), 0  ;;  %s2643_s18 = smov (!%p26_p0, %s32_s18), %s1621_s15 }
   0x7   : > { %p183_p3 = pnand %p1516_p1, %p182_p2  ;;  %p34_p4 = scmp.ge.s32.totalorder %s2643_s18, 2 }
   0x8   : > { %p224_p5 = scmp.lt.s32.totalorder (!%p183_p3), %s1613_s13, 1  ;;  %s1521_s19 = smul.u32 (!%p183_p3), 192, %s1609_s12  ;;  %v1689_v0 = vld [vmem:[%s2632_s1] ss:$0 sm:$0xff] (!%p183_p3)  ;;  %v1694_v1 = vld [vmem:[%s2632_s1 + $0x1] ss:$0 sm:$0xff] (!%p183_p3) }
   0x9   : > { %s2645_s18 = smov (%p34_p4, %s2643_s18), 0  ;;  %186 = sbr.rel (%p183_p3) target bundleno = 217 (0xd9), region = 32 }
   0xa   : > { %v1699_v2 = vld [vmem:[%s2632_s1 + $0x2] ss:$0 sm:$0xff] (!%p183_p3)  ;;  %v1706_v3 = vld [vmem:[%s2632_s1 + $0x3] ss:$0 sm:$0xff] (!%p183_p3)  ;;  %v1711_v4 = vld [vmem:[%s2632_s1 + $0x4] ss:$0 sm:$0xff] (!%p183_p3) }
   0xb   : > { %vm368_vm0 = vcmask (!%p183_p3), 1046528   ;;  %vm510_vm1 = vcmask (!%p183_p3), 1045504   ;;  %v1718_v7 = vld [vmem:[%s2632_s1 + $0x5] ss:$0 sm:$0xff] (!%p183_p3)  ;;  %v1740_v18 = vld [vmem:[%s2632_s1 + $0x6] ss:$0 sm:$0xff] (!%p183_p3) }
   0xc   : > { %v1745_v19 = vld [vmem:[%s2632_s1 + $0x7] ss:$0 sm:$0xff] (!%p183_p3)  ;;  %s1518_s21 = sshll.u32 (!%p183_p3), %s1609_s12, 3  ;;  %v1758_v29 = vld [vmem:[%s2632_s1 + $0x8] ss:$0 sm:$0xff] (!%p183_p3) }
   0xd   : > { %p1768_p6 = scmp.lt.s32.totalorder (!%p183_p3), %s1518_s21, 23 }
  0x10   : > { %s2647_s13 = smov (!%p224_p5, %s1613_s13), 1  ;;  %s2649_s21 = smov (!%p1768_p6, %s1518_s21), 23 }
  0x11   : > { %s1534_s20 = smul.u32 624, %s2647_s13 }
  0x12   : > { %s1535_s12 = smul.u32 3, %s2649_s21 }
  0x13   : > { %s231_s23 = scalar_lea.vmem %s2631_s0, %s1534_s20  ;;  %s1536_s25 = smul.u32 72, %s2647_s13 }
  0x14   : > { %s1701_s30 = scalar_lea.vmem %s231_s23, %s1521_s19 }
  0x15   : > { %v256_v5 = vld [vmem:[%s1701_s30] sm:$0xff]  ;;  %v257_v6 = vld [vmem:[%s1701_s30 + $0x8] sm:$0xff]  ;;  %v1721_v8 = vld [vmem:[%s1701_s30 + $0x18] sm:$0xff]  ;;  %s1840_s13 = sadd.s32 %s1536_s25, %s1535_s12 }
  0x16   : > { %v1724_v9 = vld [vmem:[%s1701_s30 + $0x20] sm:$0xff]  ;;  %v291_v10 = vmul.f32 %v1689_v0, %v256_v5  ;;  %v320_v11 = vmul.f32 %v1694_v1, %v256_v5  ;;  %v321_v12 = vmul.f32 %v1694_v1, %v257_v6  ;;  %v462_v13 = vmul.f32 %v1699_v2, %v256_v5  ;;  %v1751_v24 = vld [vmem:[%s1701_s30 + $0x30] sm:$0xff]  ;;  %v1773_v35 = vld [vmem:[%s1701_s30 + $0x38] sm:$0xff]  ;;  %s1519_s28 = sshll.u32 %s1840_s13, 3 }
  0x17   : > { %v463_v14 = vmul.f32 %v1699_v2, %v257_v6  ;;  %v604_v15 = vmul.f32 %v1706_v3, %v1721_v8  ;;  %v657_v16 = vmul.f32 %v1711_v4, %v1721_v8  ;;  %v658_v17 = vmul.f32 %v1711_v4, %v1724_v9  ;;  %v258_v34 = vld [vmem:[%s1701_s30 + $0x10] sm:$0x3f]  ;;  %v1787_v51 = vld [vmem:[%s1701_s30 + $0x28] sm:$0x3f]  ;;  %v1805_v62 = vld [vmem:[%s1701_s30 + $0x40] sm:$0x3f]  ;;  %s1880_s5 = scalar_lea.vmem %s2634_s3, %s1519_s28 }
  0x18   : > { %v369_v20 = vrot.slane %v320_v11, 1  ;;  %v370_v21 = vrot.slane %v321_v12, 1  ;;  %v511_v22 = vrot.slane %v462_v13, 2  ;;  %v798_v23 = vmul.f32 %v1718_v7, %v1721_v8 }
  0x19   : > { %v512_v25 = vrot.slane %v463_v14, 2  ;;  %v705_v26 = vrot.slane %v657_v16, 1  ;;  %v706_v27 = vrot.slane %v658_v17, 1  ;;  %v799_v28 = vmul.f32 %v1718_v7, %v1724_v9 }
  0x1a   : > { %v371_v30 = vsel %vm368_vm0, %v369_v20, %v370_v21  ;;  %v846_v31 = vrot.slane %v798_v23, 2  ;;  %v939_v32 = vmul.f32 %v1740_v18, %v1751_v24  ;;  %v992_v33 = vmul.f32 %v1745_v19, %v1751_v24 }
  0x1b   : > { %v433_v36 = vadd.f32 %v371_v30, %v291_v10  ;;  %v513_v37 = vsel %vm510_vm1, %v511_v22, %v512_v25  ;;  %v707_v38 = vsel %vm368_vm0, %v705_v26, %v706_v27  ;;  %v847_v39 = vrot.slane %v799_v28, 2 }
  0x1c   : > { %v993_v40 = vmul.f32 %v1745_v19, %v1773_v35  ;;  %v1040_v41 = vrot.slane %v992_v33, 1  ;;  %v1133_v42 = vmul.f32 %v1758_v29, %v1751_v24  ;;  %v1134_v43 = vmul.f32 %v1758_v29, %v1773_v35 }
  0x1d   : > { %v575_v44 = vadd.f32 %v513_v37, %v433_v36  ;;  %v848_v45 = vsel %vm510_vm1, %v846_v31, %v847_v39  ;;  %v292_v46 = vmul.f32 %v1689_v0, %v257_v6  ;;  %v322_v47 = vmul.f32 %v1694_v1, %v258_v34 }
  0x1e   : > { %v1041_v48 = vrot.slane %v993_v40, 1  ;;  %v1181_v49 = vrot.slane %v1133_v42, 2  ;;  %v1182_v50 = vrot.slane %v1134_v43, 2  ;;  %v464_v52 = vmul.f32 %v1699_v2, %v258_v34 }
  0x1f   : > { %v628_v53 = vadd.f32 %v604_v15, %v575_v44  ;;  %v372_v54 = vrot.slane %v322_v47, 1  ;;  %v605_v55 = vmul.f32 %v1706_v3, %v1724_v9  ;;  %v659_v56 = vmul.f32 %v1711_v4, %v1787_v51 }
  0x20   : > { %v1042_v57 = vsel %vm368_vm0, %v1040_v41, %v1041_v48  ;;  %v1183_v58 = vsel %vm510_vm1, %v1181_v49, %v1182_v50  ;;  %v514_v59 = vrot.slane %v464_v52, 2  ;;  %v800_v60 = vmul.f32 %v1718_v7, %v1787_v51 }
  0x21   : > { %v769_v61 = vadd.f32 %v707_v38, %v628_v53  ;;  %v373_v63 = vsel %vm368_vm0, %v370_v21, %v372_v54  ;;  %v708_v5 = vrot.slane %v659_v56, 1  ;;  %v940_v6 = vmul.f32 %v1740_v18, %v1773_v35 }
  0x22   : > { %v434_v10 = vadd.f32 %v373_v63, %v292_v46  ;;  %v515_v11 = vsel %vm510_vm1, %v512_v25, %v514_v59  ;;  %v849_v12 = vrot.slane %v800_v60, 2  ;;  %v1813_v13 = vmul.f32 %v1745_v19, %v1805_v62  ;;  %v1872_v63 = vld [vmem:[%s1701_s30 + $0x48] sm:$0xff] }
  0x23   : > { %v910_v14 = vadd.f32 %v848_v45, %v769_v61  ;;  %v709_v15 = vsel %vm368_vm0, %v706_v27, %v708_v5  ;;  %v1819_v16 = vmul.f32 %v1758_v29, %v1805_v62  ;;  %v293_v17 = vmul.f32 %v1689_v0, %v258_v34 }
  0x24   : > { %v576_v20 = vadd.f32 %v515_v11, %v434_v10  ;;  %v850_v21 = vsel %vm510_vm1, %v847_v39, %v849_v12  ;;  %v1043_v22 = vrot.slane %v1813_v13, 1  ;;  %v606_v23 = vmul.f32 %v1706_v3, %v1787_v51  ;;  %v1845_v39 = vld [vmem:[%s2633_s2] ss:$0 sm:$0xff] }
  0x25   : > { %v963_v25 = vadd.f32 %v939_v32, %v910_v14  ;;  %v1184_v26 = vrot.slane %v1819_v16, 2  ;;  %v435_v28 = vadd.f32 %v372_v54, %v293_v17  ;;  %v941_v27 = vmul.f32 %v1740_v18, %v1805_v62 }
  0x26   : > { %v629_v30 = vadd.f32 %v605_v55, %v576_v20  ;;  %v1044_v31 = vsel %vm368_vm0, %v1041_v48, %v1043_v22  ;;  %v294_v33 = vmul.f32 %v1689_v0, %v1721_v8  ;;  %v323_v34 = vmul.f32 %v1694_v1, %v1721_v8 }
  0x27   : > { %v1104_v36 = vadd.f32 %v1042_v57, %v963_v25  ;;  %v1185_v37 = vsel %vm510_vm1, %v1182_v50, %v1184_v26  ;;  %v577_v38 = vadd.f32 %v514_v59, %v435_v28  ;;  %v1838_v32 = vmul.f32 %v1694_v1, %v1724_v9 }
  0x28   : > { %v770_v40 = vadd.f32 %v709_v15, %v629_v30  ;;  %v374_v41 = vrot.slane %v323_v34, 1  ;;  %v465_v42 = vmul.f32 %v1699_v2, %v1721_v8  ;;  %v1851_v43 = vmul.f32 %v1699_v2, %v1724_v9 }
  0x29   : > { %v1245_v44 = vadd.f32 %v1183_v58, %v1104_v36  ;;  %v630_v45 = vadd.f32 %v606_v23, %v577_v38  ;;  %v375_v46 = vrot.slane %v1838_v32, 1  ;;  %v607_v47 = vmul.f32 %v1706_v3, %v1751_v24 }
  0x2a   : > { %v911_v48 = vadd.f32 %v850_v21, %v770_v40  ;;  %v516_v49 = vrot.slane %v465_v42, 2  ;;  %v517_v50 = vrot.slane %v1851_v43, 2  ;;  %v660_v52 = vmul.f32 %v1711_v4, %v1751_v24  ;;  %v1888_v21 = vld [vmem:[%s1701_s30 + $0x50] sm:$0xff] }
  0x2b   : > { %v1276_v8 = vadd.f32 %v1845_v39, %v1245_v44  ;;  %v771_v53 = vadd.f32 %v708_v5, %v630_v45  ;;  %v376_v54 = vsel %vm368_vm0, %v374_v41, %v375_v46  ;;  %v1866_v55 = vmul.f32 %v1711_v4, %v1773_v35 }
  0x2c   : > { %v964_v56 = vadd.f32 %v940_v6, %v911_v48  ;;  %v436_v57 = vadd.f32 %v376_v54, %v294_v33  ;;  %v518_v58 = vsel %vm510_vm1, %v516_v49, %v517_v50  ;;  %v710_v59 = vrot.slane %v660_v52, 1 }
  0x2d   : > { %v1300_v60 = vmul.f32 0.2, %v1276_v8  ;;  %v912_v61 = vadd.f32 %v849_v12, %v771_v53  ;;  %v711_v5 = vrot.slane %v1866_v55, 1  ;;  %v801_v10 = vmul.f32 %v1718_v7, %v1751_v24 }
  0x2e   : > { %v1105_v6 = vadd.f32 %v1044_v31, %v964_v56  ;;  %v578_v11 = vadd.f32 %v518_v58, %v436_v57  ;;  %v802_v13 = vmul.f32 %v1718_v7, %v1773_v35  ;;  %v942_v12 = vmul.f32 %v1740_v18, %v1872_v63 }
  0x2f   : > { %v1324_v14 = vmax.f32 %v1276_v8, %v1300_v60  ;;  %v965_v15 = vadd.f32 %v941_v27, %v912_v61  ;;  %v712_v16 = vsel %vm368_vm0, %v710_v59, %v711_v5  ;;  %v851_v17 = vrot.slane %v801_v10, 2 }
  0x30   : > { %v1246_v20 = vadd.f32 %v1185_v37, %v1105_v6  ;;  %v631_v23 = vadd.f32 %v607_v47, %v578_v11  ;;  %v852_v25 = vrot.slane %v802_v13, 2  ;;  %v995_v28 = vmul.f32 %v1745_v19, %v1872_v63 }
  0x31   : > { %1348 = vst [vmem:[%s1880_s5] sm:$0xff] %v1324_v14  ;;  %v1106_v30 = vadd.f32 %v1043_v22, %v965_v15  ;;  %v996_v31 = vmul.f32 %v1745_v19, %v1888_v21  ;;  %v1136_v33 = vmul.f32 %v1758_v29, %v1872_v63  ;;  %v1137_v27 = vmul.f32 %v1758_v29, %v1888_v21 }
  0x32   : > { %v1277_v34 = vadd.f32 %v1845_v39, %v1246_v20  ;;  %v772_v36 = vadd.f32 %v712_v16, %v631_v23  ;;  %v853_v37 = vsel %vm510_vm1, %v851_v17, %v852_v25  ;;  %v1045_v38 = vrot.slane %v995_v28, 1 }
  0x33   : > { %v1247_v40 = vadd.f32 %v1184_v26, %v1106_v30  ;;  %v1046_v41 = vrot.slane %v996_v31, 1  ;;  %v1186_v42 = vrot.slane %v1136_v33, 2  ;;  %v1187_v22 = vrot.slane %v1137_v27, 2 }
  0x34   : > { %v1301_v44 = vmul.f32 0.2, %v1277_v34  ;;  %v913_v45 = vadd.f32 %v853_v37, %v772_v36  ;;  %v295_v47 = vmul.f32 %v1689_v0, %v1724_v9  ;;  %v325_v48 = vmul.f32 %v1694_v1, %v1787_v51  ;;  %v1913_v9 = vld [vmem:[%s1701_s30 + $0x58] sm:$0x3f] }
  0x35   : > { %v1278_v49 = vadd.f32 %v1845_v39, %v1247_v40  ;;  %v1047_v52 = vsel %vm368_vm0, %v1045_v38, %v1046_v41  ;;  %v1188_v8 = vsel %vm510_vm1, %v1186_v42, %v1187_v22  ;;  %v467_v26 = vmul.f32 %v1699_v2, %v1787_v51 }
  0x36   : > { %v1325_v53 = vmax.f32 %v1277_v34, %v1301_v44  ;;  %v966_v54 = vadd.f32 %v942_v12, %v913_v45  ;;  %v377_v55 = vrot.slane %v325_v48, 1  ;;  %v608_v56 = vmul.f32 %v1706_v3, %v1773_v35 }
  0x37   : > { %v1302_v57 = vmul.f32 0.2, %v1278_v49  ;;  %v519_v58 = vrot.slane %v467_v26, 2  ;;  %v662_v59 = vmul.f32 %v1711_v4, %v1805_v62  ;;  %v803_v60 = vmul.f32 %v1718_v7, %v1805_v62 }
  0x38   : > { %1349 = vst [vmem:[%s1880_s5 + $0x8] sm:$0xff] %v1325_v53  ;;  %v1107_v61 = vadd.f32 %v1047_v52, %v966_v54  ;;  %v378_v10 = vsel %vm368_vm0, %v375_v46, %v377_v55  ;;  %v943_v6 = vmul.f32 %v1740_v18, %v1888_v21  ;;  %v1927_v11 = vmul.f32 %v1745_v19, %v1913_v9 }
  0x39   : > { %v1326_v13 = vmax.f32 %v1278_v49, %v1302_v57  ;;  %v437_v12 = vadd.f32 %v378_v10, %v295_v47  ;;  %v520_v14 = vsel %vm510_vm1, %v517_v50, %v519_v58  ;;  %v713_v15 = vrot.slane %v662_v59, 1 }
  0x3a   : > { %v1248_v16 = vadd.f32 %v1188_v8, %v1107_v61  ;;  %v854_v17 = vrot.slane %v803_v60, 2  ;;  %v1048_v32 = vrot.slane %v1927_v11, 1  ;;  %v1935_v46 = vmul.f32 %v1758_v29, %v1913_v9  ;;  %v1980_v60 = vld [vmem:[%s1701_s30 + $0x60] sm:$0xff] }
  0x3b   : > { %1350 = vst [vmem:[%s1880_s5 + $0x10] sm:$0xf] %v1326_v13  ;;  %v579_v20 = vadd.f32 %v520_v14, %v437_v12  ;;  %v714_v23 = vsel %vm368_vm0, %v711_v5, %v713_v15  ;;  %v296_v28 = vmul.f32 %v1689_v0, %v1787_v51  ;;  %v609_v43 = vmul.f32 %v1706_v3, %v1805_v62 }
  0x3c   : > { %v1279_v50 = vadd.f32 %v1845_v39, %v1248_v16  ;;  %v855_v30 = vsel %vm510_vm1, %v852_v25, %v854_v17  ;;  %v1049_v31 = vsel %vm368_vm0, %v1046_v41, %v1048_v32  ;;  %v1189_v33 = vrot.slane %v1935_v46, 2  ;;  %v1985_v46 = vld [vmem:[%s1701_s30 + $0x68] sm:$0xff] }
  0x3d   : > { %v632_v27 = vadd.f32 %v608_v56, %v579_v20  ;;  %v438_v34 = vadd.f32 %v377_v55, %v296_v28  ;;  %v944_v5 = vmul.f32 %v1740_v18, %v1913_v9  ;;  %v297_v51 = vmul.f32 %v1689_v0, %v1751_v24 }
  0x3e   : > { %v1303_v36 = vmul.f32 0.2, %v1279_v50  ;;  %v1190_v37 = vsel %vm510_vm1, %v1187_v22, %v1189_v33  ;;  %v326_v25 = vmul.f32 %v1694_v1, %v1751_v24  ;;  %v1958_v38 = vmul.f32 %v1694_v1, %v1773_v35 }
  0x3f   : > { %v773_v40 = vadd.f32 %v714_v23, %v632_v27  ;;  %v580_v41 = vadd.f32 %v519_v58, %v438_v34  ;;  %v468_v42 = vmul.f32 %v1699_v2, %v1751_v24  ;;  %v1964_v44 = vmul.f32 %v1699_v2, %v1773_v35 }
  0x40   : > { %v1327_v45 = vmax.f32 %v1279_v50, %v1303_v36  ;;  %v379_v47 = vrot.slane %v326_v25, 1  ;;  %v380_v22 = vrot.slane %v1958_v38, 1  ;;  %v610_v48 = vmul.f32 %v1706_v3, %v1872_v63 }
  0x41   : > { %v914_v49 = vadd.f32 %v855_v30, %v773_v40  ;;  %v633_v52 = vadd.f32 %v609_v43, %v580_v41  ;;  %v521_v8 = vrot.slane %v468_v42, 2  ;;  %v522_v26 = vrot.slane %v1964_v44, 2 }
  0x42   : > { %1351 = vst [vmem:[%s1880_s5 + $0x18] sm:$0xff] %v1327_v45  ;;  %v381_v24 = vsel %vm368_vm0, %v379_v47, %v380_v22  ;;  %v663_v53 = vmul.f32 %v1711_v4, %v1872_v63  ;;  %v664_v54 = vmul.f32 %v1711_v4, %v1888_v21  ;;  %v804_v55 = vmul.f32 %v1718_v7, %v1872_v63 }
  0x43   : > { %v967_v56 = vadd.f32 %v943_v6, %v914_v49  ;;  %v774_v57 = vadd.f32 %v713_v15, %v633_v52  ;;  %v439_v58 = vadd.f32 %v381_v24, %v297_v51  ;;  %v523_v59 = vsel %vm510_vm1, %v521_v8, %v522_v26 }
  0x44   : > { %v715_v61 = vrot.slane %v663_v53, 1  ;;  %v716_v10 = vrot.slane %v664_v54, 1  ;;  %v805_v13 = vmul.f32 %v1718_v7, %v1888_v21  ;;  %v856_v12 = vrot.slane %v804_v55, 2 }
  0x45   : > { %v1108_v14 = vadd.f32 %v1049_v31, %v967_v56  ;;  %v915_v16 = vadd.f32 %v854_v17, %v774_v57  ;;  %v581_v20 = vadd.f32 %v523_v59, %v439_v58  ;;  %v945_v6 = vmul.f32 %v1740_v18, %v1980_v60 }
  0x46   : > { %v717_v15 = vsel %vm368_vm0, %v715_v61, %v716_v10  ;;  %v857_v23 = vrot.slane %v805_v13, 2  ;;  %v998_v28 = vmul.f32 %v1745_v19, %v1980_v60  ;;  %v999_v43 = vmul.f32 %v1745_v19, %v1985_v46  ;;  %v2022_v61 = vld [vmem:[%s1701_s30 + $0x70] sm:$0x3f] }
  0x47   : > { %v1249_v50 = vadd.f32 %v1190_v37, %v1108_v14  ;;  %v968_v30 = vadd.f32 %v944_v5, %v915_v16  ;;  %v634_v27 = vadd.f32 %v610_v48, %v581_v20  ;;  %v1139_v17 = vmul.f32 %v1758_v29, %v1980_v60 }
  0x48   : > { %v858_v31 = vsel %vm510_vm1, %v856_v12, %v857_v23  ;;  %v1050_v34 = vrot.slane %v998_v28, 1  ;;  %v1051_v51 = vrot.slane %v999_v43, 1  ;;  %v1140_v36 = vmul.f32 %v1758_v29, %v1985_v46 }
  0x49   : > { %v1280_v25 = vadd.f32 %v1845_v39, %v1249_v50  ;;  %v1109_v38 = vadd.f32 %v1048_v32, %v968_v30  ;;  %v775_v40 = vadd.f32 %v717_v15, %v634_v27  ;;  %v1191_v41 = vrot.slane %v1139_v17, 2 }
  0x4a   : > { %v1052_v5 = vsel %vm368_vm0, %v1050_v34, %v1051_v51  ;;  %v1192_v37 = vrot.slane %v1140_v36, 2  ;;  %v298_v42 = vmul.f32 %v1689_v0, %v1773_v35  ;;  %v328_v44 = vmul.f32 %v1694_v1, %v1805_v62 }
  0x4b   : > { %v1304_v45 = vmul.f32 0.2, %v1280_v25  ;;  %v1250_v47 = vadd.f32 %v1189_v33, %v1109_v38  ;;  %v916_v48 = vadd.f32 %v858_v31, %v775_v40  ;;  %v470_v49 = vmul.f32 %v1699_v2, %v1805_v62 }
  0x4c   : > { %v1193_v11 = vsel %vm510_vm1, %v1191_v41, %v1192_v37  ;;  %v382_v32 = vrot.slane %v328_v44, 1  ;;  %v611_v52 = vmul.f32 %v1706_v3, %v1888_v21  ;;  %v665_v35 = vmul.f32 %v1711_v4, %v1913_v9 }
  0x4d   : > { %v1328_v8 = vmax.f32 %v1280_v25, %v1304_v45  ;;  %v1281_v24 = vadd.f32 %v1845_v39, %v1250_v47  ;;  %v969_v53 = vadd.f32 %v945_v6, %v916_v48  ;;  %v524_v54 = vrot.slane %v470_v49, 2 }
  0x4e   : > { %v383_v33 = vsel %vm368_vm0, %v380_v22, %v382_v32  ;;  %v718_v55 = vrot.slane %v665_v35, 1  ;;  %v806_v56 = vmul.f32 %v1718_v7, %v1913_v9  ;;  %v946_v57 = vmul.f32 %v1740_v18, %v1985_v46 }
  0x4f   : > { %1352 = vst [vmem:[%s1880_s5 + $0x20] sm:$0xff] %v1328_v8  ;;  %v1305_v58 = vmul.f32 0.2, %v1281_v24  ;;  %v1110_v59 = vadd.f32 %v1052_v5, %v969_v53  ;;  %v440_v13 = vadd.f32 %v383_v33, %v298_v42  ;;  %v525_v12 = vsel %vm510_vm1, %v522_v26, %v524_v54 }
  0x50   : > { %v719_v14 = vsel %vm368_vm0, %v716_v10, %v718_v55  ;;  %v859_v16 = vrot.slane %v806_v56, 2  ;;  %v2028_v22 = vmul.f32 %v1745_v19, %v2022_v61  ;;  %v2032_v20 = vmul.f32 %v1758_v29, %v2022_v61 }
  0x51   : > { %v1329_v6 = vmax.f32 %v1281_v24, %v1305_v58  ;;  %v1251_v15 = vadd.f32 %v1193_v11, %v1110_v59  ;;  %v582_v28 = vadd.f32 %v525_v12, %v440_v13  ;;  %v299_v43 = vmul.f32 %v1689_v0, %v1805_v62  ;;  %v2082_v12 = vld [vmem:[%s1701_s30 + $0x78] sm:$0xff] }
  0x52   : > { %v860_v50 = vsel %vm510_vm1, %v857_v23, %v859_v16  ;;  %v1053_v26 = vrot.slane %v2028_v22, 1  ;;  %v1194_v10 = vrot.slane %v2032_v20, 2  ;;  %v612_v30 = vmul.f32 %v1706_v3, %v1913_v9 }
  0x53   : > { %1353 = vst [vmem:[%s1880_s5 + $0x28] sm:$0xf] %v1329_v6  ;;  %v1282_v27 = vadd.f32 %v1845_v39, %v1251_v15  ;;  %v635_v17 = vadd.f32 %v611_v52, %v582_v28  ;;  %v441_v31 = vadd.f32 %v382_v32, %v299_v43  ;;  %v947_v34 = vmul.f32 %v1740_v18, %v2022_v61 }
  0x54   : > { %v1054_v36 = vsel %vm368_vm0, %v1051_v51, %v1053_v26  ;;  %v1195_v62 = vsel %vm510_vm1, %v1192_v37, %v1194_v10  ;;  %v300_v23 = vmul.f32 %v1689_v0, %v1872_v63  ;;  %v329_v25 = vmul.f32 %v1694_v1, %v1872_v63 }
  0x55   : > { %v1306_v38 = vmul.f32 0.2, %v1282_v27  ;;  %v776_v40 = vadd.f32 %v719_v14, %v635_v17  ;;  %v583_v41 = vadd.f32 %v524_v54, %v441_v31  ;;  %v2055_v5 = vmul.f32 %v1694_v1, %v1888_v21  ;;  %v2087_v14 = vld [vmem:[%s1701_s30 + $0x80] sm:$0xff] }
  0x56   : > { %v384_v42 = vrot.slane %v329_v25, 1  ;;  %v471_v51 = vmul.f32 %v1699_v2, %v1872_v63  ;;  %v2061_v37 = vmul.f32 %v1699_v2, %v1888_v21  ;;  %v613_v44 = vmul.f32 %v1706_v3, %v1980_v60 }
  0x57   : > { %v1330_v45 = vmax.f32 %v1282_v27, %v1306_v38  ;;  %v917_v47 = vadd.f32 %v860_v50, %v776_v40  ;;  %v636_v48 = vadd.f32 %v612_v30, %v583_v41  ;;  %v385_v49 = vrot.slane %v2055_v5, 1 }
  0x58   : > { %v526_v11 = vrot.slane %v471_v51, 2  ;;  %v527_v32 = vrot.slane %v2061_v37, 2  ;;  %v666_v52 = vmul.f32 %v1711_v4, %v1980_v60  ;;  %v2071_v63 = vmul.f32 %v1711_v4, %v1985_v46 }
  0x59   : > { %1354 = vst [vmem:[%s1880_s5 + $0x30] sm:$0xff] %v1330_v45  ;;  %v970_v35 = vadd.f32 %v946_v57, %v917_v47  ;;  %v777_v8 = vadd.f32 %v718_v55, %v636_v48  ;;  %v386_v24 = vsel %vm368_vm0, %v384_v42, %v385_v49  ;;  %v807_v53 = vmul.f32 %v1718_v7, %v1980_v60 }
  0x5a   : > { %v442_v54 = vadd.f32 %v386_v24, %v300_v23  ;;  %v528_v33 = vsel %vm510_vm1, %v526_v11, %v527_v32  ;;  %v720_v56 = vrot.slane %v666_v52, 1  ;;  %v721_v58 = vrot.slane %v2071_v63, 1 }
  0x5b   : > { %v1111_v59 = vadd.f32 %v1054_v36, %v970_v35  ;;  %v918_v13 = vadd.f32 %v859_v16, %v777_v8  ;;  %v808_v55 = vmul.f32 %v1718_v7, %v1985_v46  ;;  %v861_v57 = vrot.slane %v807_v53, 2  ;;  %v2118_v35 = vld [vmem:[%s1701_s30 + $0x88] sm:$0x3f] }
  0x5c   : > { %v584_v22 = vadd.f32 %v528_v33, %v442_v54  ;;  %v722_v6 = vsel %vm368_vm0, %v720_v56, %v721_v58  ;;  %v948_v15 = vmul.f32 %v1740_v18, %v2082_v12  ;;  %v1001_v28 = vmul.f32 %v1745_v19, %v2082_v12 }
  0x5d   : > { %v1252_v43 = vadd.f32 %v1195_v62, %v1111_v59  ;;  %v971_v50 = vadd.f32 %v947_v34, %v918_v13  ;;  %v862_v16 = vrot.slane %v808_v55, 2  ;;  %v1002_v30 = vmul.f32 %v1745_v19, %v2087_v14 }
  0x5e   : > { %v637_v27 = vadd.f32 %v613_v44, %v584_v22  ;;  %v1055_v17 = vrot.slane %v1001_v28, 1  ;;  %v1142_v31 = vmul.f32 %v1758_v29, %v2082_v12  ;;  %v1143_v36 = vmul.f32 %v1758_v29, %v2087_v14 }
  0x5f   : > { %v1283_v23 = vadd.f32 %v1845_v39, %v1252_v43  ;;  %v1112_v25 = vadd.f32 %v1053_v26, %v971_v50  ;;  %v863_v38 = vsel %vm510_vm1, %v861_v57, %v862_v16  ;;  %v1056_v40 = vrot.slane %v1002_v30, 1 }
  0x60   : > { %v778_v62 = vadd.f32 %v722_v6, %v637_v27  ;;  %v1196_v34 = vrot.slane %v1142_v31, 2  ;;  %v1197_v41 = vrot.slane %v1143_v36, 2  ;;  %v301_v5 = vmul.f32 %v1689_v0, %v1888_v21 }
  0x61   : > { %v1307_v42 = vmul.f32 0.2, %v1283_v23  ;;  %v1253_v51 = vadd.f32 %v1194_v10, %v1112_v25  ;;  %v1057_v44 = vsel %vm368_vm0, %v1055_v17, %v1056_v40  ;;  %v331_v26 = vmul.f32 %v1694_v1, %v1913_v9 }
  0x62   : > { %v919_v45 = vadd.f32 %v863_v38, %v778_v62  ;;  %v1198_v47 = vsel %vm510_vm1, %v1196_v34, %v1197_v41  ;;  %v473_v48 = vmul.f32 %v1699_v2, %v1913_v9  ;;  %v614_v11 = vmul.f32 %v1706_v3, %v1985_v46 }
  0x63   : > { %v1331_v21 = vmax.f32 %v1283_v23, %v1307_v42  ;;  %v1284_v52 = vadd.f32 %v1845_v39, %v1253_v51  ;;  %v387_v20 = vrot.slane %v331_v26, 1  ;;  %v668_v10 = vmul.f32 %v1711_v4, %v2022_v61 }
  0x64   : > { %v972_v63 = vadd.f32 %v948_v15, %v919_v45  ;;  %v529_v8 = vrot.slane %v473_v48, 2  ;;  %v809_v24 = vmul.f32 %v1718_v7, %v2022_v61  ;;  %v949_v53 = vmul.f32 %v1740_v18, %v2087_v14 }
  0x65   : > { %1355 = vst [vmem:[%s1880_s5 + $0x38] sm:$0xff] %v1331_v21  ;;  %v1308_v54 = vmul.f32 0.2, %v1284_v52  ;;  %v388_v33 = vsel %vm368_vm0, %v385_v49, %v387_v20  ;;  %v723_v56 = vrot.slane %v668_v10, 1  ;;  %v2128_v59 = vmul.f32 %v1745_v19, %v2118_v35 }
  0x66   : > { %v1113_v13 = vadd.f32 %v1057_v44, %v972_v63  ;;  %v443_v55 = vadd.f32 %v388_v33, %v301_v5  ;;  %v530_v57 = vsel %vm510_vm1, %v527_v32, %v529_v8  ;;  %v864_v22 = vrot.slane %v809_v24, 2 }
  0x67   : > { %v1332_v6 = vmax.f32 %v1284_v52, %v1308_v54  ;;  %v724_v15 = vsel %vm368_vm0, %v721_v58, %v723_v56  ;;  %v1058_v28 = vrot.slane %v2128_v59, 1  ;;  %v2137_v49 = vmul.f32 %v1758_v29, %v2118_v35  ;;  %v2183_v54 = vld [vmem:[%s1701_s30 + $0x90] sm:$0xff] }
  0x68   : > { %v1254_v43 = vadd.f32 %v1198_v47, %v1113_v13  ;;  %v585_v50 = vadd.f32 %v530_v57, %v443_v55  ;;  %v865_v30 = vsel %vm510_vm1, %v862_v16, %v864_v22  ;;  %v302_v27 = vmul.f32 %v1689_v0, %v1913_v9 }
  0x69   : > { %1356 = vst [vmem:[%s1880_s5 + $0x40] sm:$0xf] %v1332_v6  ;;  %v1059_v37 = vsel %vm368_vm0, %v1056_v40, %v1058_v28  ;;  %v1199_v32 = vrot.slane %v2137_v49, 2  ;;  %v615_v58 = vmul.f32 %v1706_v3, %v2022_v61  ;;  %v950_v17 = vmul.f32 %v1740_v18, %v2118_v35 }
  0x6a   : > { %v1285_v31 = vadd.f32 %v1845_v39, %v1254_v43  ;;  %v638_v36 = vadd.f32 %v614_v11, %v585_v50  ;;  %v444_v16 = vadd.f32 %v387_v20, %v302_v27  ;;  %v303_v9 = vmul.f32 %v1689_v0, %v1980_v60  ;;  %v2188_v43 = vld [vmem:[%s1701_s30 + $0x98] sm:$0xff] }
  0x6b   : > { %v1200_v23 = vsel %vm510_vm1, %v1197_v41, %v1199_v32  ;;  %v332_v25 = vmul.f32 %v1694_v1, %v1980_v60  ;;  %v2161_v38 = vmul.f32 %v1694_v1, %v1985_v46  ;;  %v474_v40 = vmul.f32 %v1699_v2, %v1980_v60 }
  0x6c   : > { %v1309_v62 = vmul.f32 0.2, %v1285_v31  ;;  %v779_v34 = vadd.f32 %v724_v15, %v638_v36  ;;  %v586_v5 = vadd.f32 %v529_v8, %v444_v16  ;;  %v2167_v42 = vmul.f32 %v1699_v2, %v1985_v46 }
  0x6d   : > { %v389_v51 = vrot.slane %v332_v25, 1  ;;  %v390_v41 = vrot.slane %v2161_v38, 1  ;;  %v531_v44 = vrot.slane %v474_v40, 2  ;;  %v616_v26 = vmul.f32 %v1706_v3, %v2082_v12 }
  0x6e   : > { %v1333_v45 = vmax.f32 %v1285_v31, %v1309_v62  ;;  %v920_v47 = vadd.f32 %v865_v30, %v779_v34  ;;  %v639_v48 = vadd.f32 %v615_v58, %v586_v5  ;;  %v532_v60 = vrot.slane %v2167_v42, 2 }
  0x6f   : > { %v391_v11 = vsel %vm368_vm0, %v389_v51, %v390_v41  ;;  %v669_v21 = vmul.f32 %v1711_v4, %v2082_v12  ;;  %v670_v52 = vmul.f32 %v1711_v4, %v2087_v14  ;;  %v810_v20 = vmul.f32 %v1718_v7, %v2082_v12 }
  0x70   : > { %1357 = vst [vmem:[%s1880_s5 + $0x48] sm:$0xff] %v1333_v45  ;;  %v973_v10 = vadd.f32 %v949_v53, %v920_v47  ;;  %v780_v63 = vadd.f32 %v723_v56, %v639_v48  ;;  %v445_v8 = vadd.f32 %v391_v11, %v303_v9  ;;  %v533_v24 = vsel %vm510_vm1, %v531_v44, %v532_v60 }
  0x71   : > { %v725_v33 = vrot.slane %v669_v21, 1  ;;  %v726_v13 = vrot.slane %v670_v52, 1  ;;  %v811_v55 = vmul.f32 %v1718_v7, %v2087_v14  ;;  %v866_v57 = vrot.slane %v810_v20, 2 }
  0x72   : > { %v1114_v6 = vadd.f32 %v1059_v37, %v973_v10  ;;  %v921_v15 = vadd.f32 %v864_v22, %v780_v63  ;;  %v587_v50 = vadd.f32 %v533_v24, %v445_v8  ;;  %v951_v53 = vmul.f32 %v1740_v18, %v2183_v54 }
  0x73   : > { %v727_v56 = vsel %vm368_vm0, %v725_v33, %v726_v13  ;;  %v867_v30 = vrot.slane %v811_v55, 2  ;;  %v1004_v27 = vmul.f32 %v1745_v19, %v2183_v54  ;;  %v1005_v58 = vmul.f32 %v1745_v19, %v2188_v43  ;;  %v2227_v33 = vld [vmem:[%s1701_s30 + $0xa0] sm:$0x3f] }
  0x74   : > { %v1255_v31 = vadd.f32 %v1200_v23, %v1114_v6  ;;  %v974_v36 = vadd.f32 %v950_v17, %v921_v15  ;;  %v640_v16 = vadd.f32 %v616_v26, %v587_v50  ;;  %v1145_v22 = vmul.f32 %v1758_v29, %v2183_v54 }
  0x75   : > { %v868_v37 = vsel %vm510_vm1, %v866_v57, %v867_v30  ;;  %v1060_v9 = vrot.slane %v1004_v27, 1  ;;  %v1061_v25 = vrot.slane %v1005_v58, 1  ;;  %v1146_v38 = vmul.f32 %v1758_v29, %v2188_v43 }
  0x76   : > { %v1286_v40 = vadd.f32 %v1845_v39, %v1255_v31  ;;  %v1115_v62 = vadd.f32 %v1058_v28, %v974_v36  ;;  %v781_v34 = vadd.f32 %v727_v56, %v640_v16  ;;  %v1201_v5 = vrot.slane %v1145_v22, 2 }
  0x77   : > { %v1062_v17 = vsel %vm368_vm0, %v1060_v9, %v1061_v25  ;;  %v1202_v23 = vrot.slane %v1146_v38, 2  ;;  %v304_v42 = vmul.f32 %v1689_v0, %v1985_v46  ;;  %v334_v51 = vmul.f32 %v1694_v1, %v2022_v61 }
  0x78   : > { %v1310_v44 = vmul.f32 0.2, %v1286_v40  ;;  %v1256_v26 = vadd.f32 %v1199_v32, %v1115_v62  ;;  %v922_v45 = vadd.f32 %v868_v37, %v781_v34  ;;  %v476_v59 = vmul.f32 %v1699_v2, %v2022_v61 }
  0x79   : > { %v1203_v28 = vsel %vm510_vm1, %v1201_v5, %v1202_v23  ;;  %v392_v47 = vrot.slane %v334_v51, 1  ;;  %v617_v48 = vmul.f32 %v1706_v3, %v2087_v14  ;;  %v671_v46 = vmul.f32 %v1711_v4, %v2118_v35 }
  0x7a   : > { %v1334_v11 = vmax.f32 %v1286_v40, %v1310_v44  ;;  %v1287_v21 = vadd.f32 %v1845_v39, %v1256_v26  ;;  %v975_v49 = vadd.f32 %v951_v53, %v922_v45  ;;  %v534_v52 = vrot.slane %v476_v59, 2 }
  0x7b   : > { %v393_v32 = vsel %vm368_vm0, %v390_v41, %v392_v47  ;;  %v728_v20 = vrot.slane %v671_v46, 1  ;;  %v812_v10 = vmul.f32 %v1718_v7, %v2118_v35  ;;  %v952_v63 = vmul.f32 %v1740_v18, %v2188_v43 }
  0x7c   : > { %1358 = vst [vmem:[%s1880_s5 + $0x50] sm:$0xff] %v1334_v11  ;;  %v1311_v8 = vmul.f32 0.2, %v1287_v21  ;;  %v1116_v24 = vadd.f32 %v1062_v17, %v975_v49  ;;  %v446_v55 = vadd.f32 %v393_v32, %v304_v42  ;;  %v535_v57 = vsel %vm510_vm1, %v532_v60, %v534_v52  ;;  %v2289_v32 = vld [vmem:[%s1701_s30 + $0xa8] sm:$0xff] }
  0x7d   : > { %v729_v6 = vsel %vm368_vm0, %v726_v13, %v728_v20  ;;  %v869_v15 = vrot.slane %v812_v10, 2  ;;  %v2233_v41 = vmul.f32 %v1745_v19, %v2227_v33  ;;  %v2237_v50 = vmul.f32 %v1758_v29, %v2227_v33 }
  0x7e   : > { %v1335_v53 = vmax.f32 %v1287_v21, %v1311_v8  ;;  %v1257_v56 = vadd.f32 %v1203_v28, %v1116_v24  ;;  %v588_v27 = vadd.f32 %v535_v57, %v446_v55  ;;  %v305_v58 = vmul.f32 %v1689_v0, %v2022_v61 }
  0x7f   : > { %v870_v31 = vsel %vm510_vm1, %v867_v30, %v869_v15  ;;  %v1063_v60 = vrot.slane %v2233_v41, 1  ;;  %v1204_v13 = vrot.slane %v2237_v50, 2  ;;  %v618_v36 = vmul.f32 %v1706_v3, %v2118_v35 }
  0x80   : > { %1359 = vst [vmem:[%s1880_s5 + $0x58] sm:$0xf] %v1335_v53  ;;  %v1288_v16 = vadd.f32 %v1845_v39, %v1257_v56  ;;  %v641_v22 = vadd.f32 %v617_v48, %v588_v27  ;;  %v447_v37 = vadd.f32 %v392_v47, %v305_v58  ;;  %v953_v9 = vmul.f32 %v1740_v18, %v2227_v33 }
  0x81   : > { %v1064_v38 = vsel %vm368_vm0, %v1061_v25, %v1063_v60  ;;  %v1205_v61 = vsel %vm510_vm1, %v1202_v23, %v1204_v13  ;;  %v306_v30 = vmul.f32 %v1689_v0, %v2082_v12  ;;  %v335_v40 = vmul.f32 %v1694_v1, %v2082_v12 }
  0x82   : > { %v1312_v62 = vmul.f32 0.2, %v1288_v16  ;;  %v782_v34 = vadd.f32 %v729_v6, %v641_v22  ;;  %v589_v5 = vadd.f32 %v534_v52, %v447_v37  ;;  %v2260_v17 = vmul.f32 %v1694_v1, %v2087_v14 }
  0x83   : > { %v394_v42 = vrot.slane %v335_v40, 1  ;;  %v477_v25 = vmul.f32 %v1699_v2, %v2082_v12  ;;  %v2266_v23 = vmul.f32 %v1699_v2, %v2087_v14  ;;  %v619_v0 = vmul.f32 %v1706_v3, %v2183_v54 }
  0x84   : > { %v1336_v51 = vmax.f32 %v1288_v16, %v1312_v62  ;;  %v923_v44 = vadd.f32 %v870_v31, %v782_v34  ;;  %v642_v26 = vadd.f32 %v618_v36, %v589_v5  ;;  %v395_v45 = vrot.slane %v2260_v17, 1 }
  0x85   : > { %v536_v59 = vrot.slane %v477_v25, 2  ;;  %v537_v1 = vrot.slane %v2266_v23, 2  ;;  %v672_v28 = vmul.f32 %v1711_v4, %v2183_v54  ;;  %v2276_v2 = vmul.f32 %v1711_v4, %v2188_v43 }
  0x86   : > { %1360 = vst [vmem:[%s1880_s5 + $0x60] sm:$0xff] %v1336_v51  ;;  %v976_v12 = vadd.f32 %v952_v63, %v923_v44  ;;  %v783_v3 = vadd.f32 %v728_v20, %v642_v26  ;;  %v396_v47 = vsel %vm368_vm0, %v394_v42, %v395_v45  ;;  %v813_v48 = vmul.f32 %v1718_v7, %v2183_v54  ;;  %v2296_v63 = vld [vmem:[%s1701_s30 + $0xb0] sm:$0xff]  ;;  %v2353_v51 = vld [vmem:[%s2632_s1 + $0x4] ss:$0 sm:$0xff] }
  0x87   : > { %v448_v46 = vadd.f32 %v396_v47, %v306_v30  ;;  %v538_v11 = vsel %vm510_vm1, %v536_v59, %v537_v1  ;;  %v730_v21 = vrot.slane %v672_v28, 1  ;;  %v731_v49 = vrot.slane %v2276_v2, 1  ;;  %v2330_v30 = vld [vmem:[%s2632_s1 + $0x1] ss:$0 sm:$0xff]  ;;  %v2358_v59 = vld [vmem:[%s1701_s30 + $0xb8] sm:$0x3f] }
  0x88   : > { %v1117_v4 = vadd.f32 %v1064_v38, %v976_v12  ;;  %v924_v52 = vadd.f32 %v869_v15, %v783_v3  ;;  %v2293_v20 = vmul.f32 %v1718_v7, %v2188_v43  ;;  %v871_v10 = vrot.slane %v813_v48, 2  ;;  %v2363_v12 = vld [vmem:[%s2632_s1 + $0x5] ss:$0 sm:$0xff]  ;;  %v2372_v47 = vld [vmem:[%s2632_s1 + $0x6] ss:$0 sm:$0xff] }
  0x89   : > { %v590_v8 = vadd.f32 %v538_v11, %v448_v46  ;;  %v732_v24 = vsel %vm368_vm0, %v730_v21, %v731_v49  ;;  %v954_v55 = vmul.f32 %v1740_v18, %v2289_v32  ;;  %v1007_v57 = vmul.f32 %v1745_v19, %v2289_v32 }
  0x8a   : > { %v1258_v6 = vadd.f32 %v1205_v61, %v1117_v4  ;;  %v977_v15 = vadd.f32 %v953_v9, %v924_v52  ;;  %v872_v41 = vrot.slane %v2293_v20, 2  ;;  %v1008_v7 = vmul.f32 %v1745_v19, %v2296_v63  ;;  %v2320_v19 = vld [vmem:[%s2632_s1] ss:$0 sm:$0xff]  ;;  %v2383_v4 = vld [vmem:[%s2632_s1 + $0x7] ss:$0 sm:$0xff] }
  0x8b   : > { %v643_v53 = vadd.f32 %v619_v0, %v590_v8  ;;  %v1065_v56 = vrot.slane %v1007_v57, 1  ;;  %v1148_v27 = vmul.f32 %v1758_v29, %v2289_v32  ;;  %v2312_v58 = vmul.f32 %v1758_v29, %v2296_v63  ;;  %v2400_v57 = vld [vmem:[%s2632_s1 + $0x8] ss:$0 sm:$0xff] }
  0x8c   : > { %v1289_v18 = vadd.f32 %v1845_v39, %v1258_v6  ;;  %v1118_v31 = vadd.f32 %v1063_v60, %v977_v15  ;;  %v873_v36 = vsel %vm510_vm1, %v871_v10, %v872_v41  ;;  %v1066_v16 = vrot.slane %v1008_v7, 1 }
  0x8d   : > { %v784_v22 = vadd.f32 %v732_v24, %v643_v53  ;;  %v1206_v37 = vrot.slane %v1148_v27, 2  ;;  %v1207_v9 = vrot.slane %v2312_v58, 2  ;;  %v307_v38 = vmul.f32 %v2320_v19, %v2087_v14  ;;  %v2338_v14 = vld [vmem:[%s2632_s1 + $0x2] ss:$0 sm:$0xff] }
  0x8e   : > { %v1313_v29 = vmul.f32 0.2, %v1289_v18  ;;  %v1259_v61 = vadd.f32 %v1204_v13, %v1118_v31  ;;  %v1067_v60 = vsel %vm368_vm0, %v1065_v56, %v1066_v16  ;;  %v337_v40 = vmul.f32 %v2330_v30, %v2118_v35  ;;  %v2345_v13 = vld [vmem:[%s2632_s1 + $0x3] ss:$0 sm:$0xff] }
  0x8f   : > { %v925_v62 = vadd.f32 %v873_v36, %v784_v22  ;;  %v1208_v34 = vsel %vm510_vm1, %v1206_v37, %v1207_v9  ;;  %v479_v50 = vmul.f32 %v2338_v14, %v2118_v35  ;;  %v620_v5 = vmul.f32 %v2345_v13, %v2188_v43 }
  0x90   : > { %v1337_v42 = vmax.f32 %v1289_v18, %v1313_v29  ;;  %v1290_v25 = vadd.f32 %v1845_v39, %v1259_v61  ;;  %v397_v0 = vrot.slane %v337_v40, 1  ;;  %v674_v44 = vmul.f32 %v2353_v51, %v2227_v33 }
  0x91   : > { %v978_v26 = vadd.f32 %v954_v55, %v925_v62  ;;  %v539_v28 = vrot.slane %v479_v50, 2  ;;  %v2367_v3 = vmul.f32 %v2363_v12, %v2227_v33  ;;  %v955_v48 = vmul.f32 %v2372_v47, %v2296_v63 }
  0x92   : > { %1361 = vst [vmem:[%s1880_s5 + $0x68] sm:$0xff] %v1337_v42  ;;  %v1314_v46 = vmul.f32 0.2, %v1290_v25  ;;  %v398_v11 = vsel %vm368_vm0, %v395_v45, %v397_v0  ;;  %v733_v21 = vrot.slane %v674_v44, 1  ;;  %v2387_v52 = vmul.f32 %v2383_v4, %v2358_v59 }
  0x93   : > { %v1119_v20 = vadd.f32 %v1067_v60, %v978_v26  ;;  %v449_v10 = vadd.f32 %v398_v11, %v307_v38  ;;  %v540_v8 = vsel %vm510_vm1, %v537_v1, %v539_v28  ;;  %v874_v17 = vrot.slane %v2367_v3, 2  ;;  %v2452_v3 = vld [vmem:[%s1701_s30 + $0xc0] sm:$0xff] }
  0x94   : > { %v1338_v45 = vmax.f32 %v1290_v25, %v1314_v46  ;;  %v734_v24 = vsel %vm368_vm0, %v731_v49, %v733_v21  ;;  %v1068_v55 = vrot.slane %v2387_v52, 1  ;;  %v2404_v6 = vmul.f32 %v2400_v57, %v2358_v59 }
  0x95   : > { %v1260_v23 = vadd.f32 %v1208_v34, %v1119_v20  ;;  %v591_v1 = vadd.f32 %v540_v8, %v449_v10  ;;  %v875_v15 = vsel %vm510_vm1, %v872_v41, %v874_v17  ;;  %v308_v2 = vmul.f32 %v2320_v19, %v2118_v35 }
  0x96   : > { %1362 = vst [vmem:[%s1880_s5 + $0x70] sm:$0xf] %v1338_v45  ;;  %v1069_v49 = vsel %vm368_vm0, %v1066_v16, %v1068_v55  ;;  %v1209_v7 = vrot.slane %v2404_v6, 2  ;;  %v621_v53 = vmul.f32 %v2345_v13, %v2227_v33  ;;  %v956_v56 = vmul.f32 %v2372_v47, %v2358_v59 }
  0x97   : > { %v1291_v27 = vadd.f32 %v1845_v39, %v1260_v23  ;;  %v644_v58 = vadd.f32 %v620_v5, %v591_v1  ;;  %v450_v41 = vadd.f32 %v397_v0, %v308_v2  ;;  %v309_v35 = vmul.f32 %v2320_v19, %v2183_v54 }
  0x98   : > { %v1210_v18 = vsel %vm510_vm1, %v1207_v9, %v1209_v7  ;;  %v338_v31 = vmul.f32 %v2330_v30, %v2183_v54  ;;  %v2428_v36 = vmul.f32 %v2330_v30, %v2188_v43  ;;  %v480_v16 = vmul.f32 %v2338_v14, %v2183_v54 }
  0x99   : > { %v1315_v39 = vmul.f32 0.2, %v1291_v27  ;;  %v785_v22 = vadd.f32 %v734_v24, %v644_v58  ;;  %v592_v37 = vadd.f32 %v539_v28, %v450_v41  ;;  %v2434_v38 = vmul.f32 %v2338_v14, %v2188_v43  ;;  %v2457_v24 = vld [vmem:[%s1701_s30 + $0xc8] sm:$0xff] }
  0x9a   : > { %v399_v29 = vrot.slane %v338_v31, 1  ;;  %v400_v9 = vrot.slane %v2428_v36, 1  ;;  %v541_v61 = vrot.slane %v480_v16, 2  ;;  %v622_v60 = vmul.f32 %v2345_v13, %v2289_v32  ;;  %v2474_v36 = vld [vmem:[%s2633_s2] ss:$0 sm:$0xff] }
  0x9b   : > { %v1339_v40 = vmax.f32 %v1291_v27, %v1315_v39  ;;  %v926_v62 = vadd.f32 %v875_v15, %v785_v22  ;;  %v645_v34 = vadd.f32 %v621_v53, %v592_v37  ;;  %v542_v54 = vrot.slane %v2434_v38, 2 }
  0x9c   : > { %v401_v50 = vsel %vm368_vm0, %v399_v29, %v400_v9  ;;  %v675_v5 = vmul.f32 %v2353_v51, %v2289_v32  ;;  %v676_v42 = vmul.f32 %v2353_v51, %v2296_v63  ;;  %v816_v25 = vmul.f32 %v2363_v12, %v2289_v32 }
  0x9d   : > { %1363 = vst [vmem:[%s1880_s5 + $0x78] sm:$0xff] %v1339_v40  ;;  %v979_v0 = vadd.f32 %v955_v48, %v926_v62  ;;  %v786_v44 = vadd.f32 %v733_v21, %v645_v34  ;;  %v451_v26 = vadd.f32 %v401_v50, %v309_v35  ;;  %v543_v28 = vsel %vm510_vm1, %v541_v61, %v542_v54 }
  0x9e   : > { %v735_v46 = vrot.slane %v675_v5, 1  ;;  %v736_v11 = vrot.slane %v676_v42, 1  ;;  %v817_v20 = vmul.f32 %v2363_v12, %v2296_v63  ;;  %v876_v10 = vrot.slane %v816_v25, 2 }
  0x9f   : > { %v1120_v8 = vadd.f32 %v1069_v49, %v979_v0  ;;  %v927_v45 = vadd.f32 %v874_v17, %v786_v44  ;;  %v593_v23 = vadd.f32 %v543_v28, %v451_v26  ;;  %v957_v48 = vmul.f32 %v2372_v47, %v2452_v3 }
  0xa0   : > { %v737_v21 = vsel %vm368_vm0, %v735_v46, %v736_v11  ;;  %v877_v1 = vrot.slane %v817_v20, 2  ;;  %v1010_v15 = vmul.f32 %v2383_v4, %v2452_v3  ;;  %v1011_v2 = vmul.f32 %v2383_v4, %v2457_v24  ;;  %v2501_v20 = vld [vmem:[%s1701_s30 + $0xd0] sm:$0x3f] }
  0xa1   : > { %v1261_v53 = vadd.f32 %v1210_v18, %v1120_v8  ;;  %v980_v27 = vadd.f32 %v956_v56, %v927_v45  ;;  %v646_v58 = vadd.f32 %v622_v60, %v593_v23  ;;  %v1151_v17 = vmul.f32 %v2400_v57, %v2452_v3 }
  0xa2   : > { %v878_v49 = vsel %vm510_vm1, %v876_v10, %v877_v1  ;;  %v1070_v41 = vrot.slane %v1010_v15, 1  ;;  %v1071_v35 = vrot.slane %v1011_v2, 1  ;;  %v1152_v31 = vmul.f32 %v2400_v57, %v2457_v24 }
  0xa3   : > { %v1292_v16 = vadd.f32 %v2474_v36, %v1261_v53  ;;  %v1121_v56 = vadd.f32 %v1068_v55, %v980_v27  ;;  %v787_v18 = vadd.f32 %v737_v21, %v646_v58  ;;  %v1211_v39 = vrot.slane %v1151_v17, 2 }
  0xa4   : > { %v1072_v22 = vsel %vm368_vm0, %v1070_v41, %v1071_v35  ;;  %v1212_v37 = vrot.slane %v1152_v31, 2  ;;  %v310_v29 = vmul.f32 %v2320_v19, %v2188_v43  ;;  %v340_v61 = vmul.f32 %v2330_v30, %v2227_v33 }
  0xa5   : > { %v1316_v60 = vmul.f32 0.2, %v1292_v16  ;;  %v1262_v40 = vadd.f32 %v1209_v7, %v1121_v56  ;;  %v928_v62 = vadd.f32 %v878_v49, %v787_v18  ;;  %v482_v52 = vmul.f32 %v2338_v14, %v2227_v33 }
  0xa6   : > { %v1213_v55 = vsel %vm510_vm1, %v1211_v39, %v1212_v37  ;;  %v402_v34 = vrot.slane %v340_v61, 1  ;;  %v623_v50 = vmul.f32 %v2345_v13, %v2296_v63  ;;  %v677_v43 = vmul.f32 %v2353_v51, %v2358_v59 }
  0xa7   : > { %v1340_v5 = vmax.f32 %v1292_v16, %v1316_v60  ;;  %v1293_v42 = vadd.f32 %v2474_v36, %v1262_v40  ;;  %v981_v6 = vadd.f32 %v957_v48, %v928_v62  ;;  %v544_v25 = vrot.slane %v482_v52, 2 }
  0xa8   : > { %v403_v7 = vsel %vm368_vm0, %v400_v9, %v402_v34  ;;  %v738_v0 = vrot.slane %v677_v43, 1  ;;  %v818_v44 = vmul.f32 %v2363_v12, %v2358_v59  ;;  %v958_v26 = vmul.f32 %v2372_v47, %v2457_v24 }
  0xa9   : > { %1364 = vst [vmem:[%s1880_s5 + $0x80] sm:$0xff] %v1340_v5  ;;  %v1317_v28 = vmul.f32 0.2, %v1293_v42  ;;  %v1122_v46 = vadd.f32 %v1072_v22, %v981_v6  ;;  %v452_v10 = vadd.f32 %v403_v7, %v310_v29  ;;  %v545_v8 = vsel %vm510_vm1, %v542_v54, %v544_v25  ;;  %v2558_v7 = vld [vmem:[%s1701_s30 + $0xe0] sm:$0xff] }
  0xaa   : > { %v739_v9 = vsel %vm368_vm0, %v736_v11, %v738_v0  ;;  %v879_v45 = vrot.slane %v818_v44, 2  ;;  %v2509_v23 = vmul.f32 %v2383_v4, %v2501_v20  ;;  %v2513_v48 = vmul.f32 %v2400_v57, %v2501_v20 }
  0xab   : > { %v1341_v21 = vmax.f32 %v1293_v42, %v1317_v28  ;;  %v1263_v15 = vadd.f32 %v1213_v55, %v1122_v46  ;;  %v594_v2 = vadd.f32 %v545_v8, %v452_v10  ;;  %v311_v53 = vmul.f32 %v2320_v19, %v2227_v33  ;;  %v283_v42 = vld [vmem:[%s1701_s30 + $0xd8] sm:$0xff] }
  0xac   : > { %v880_v38 = vsel %vm510_vm1, %v877_v1, %v879_v45  ;;  %v1073_v54 = vrot.slane %v2509_v23, 1  ;;  %v1214_v11 = vrot.slane %v2513_v48, 2  ;;  %v624_v27 = vmul.f32 %v2345_v13, %v2358_v59 }
  0xad   : > { %1365 = vst [vmem:[%s1880_s5 + $0x88] sm:$0xf] %v1341_v21  ;;  %v1294_v58 = vadd.f32 %v2474_v36, %v1263_v15  ;;  %v647_v17 = vadd.f32 %v623_v50, %v594_v2  ;;  %v453_v49 = vadd.f32 %v402_v34, %v311_v53  ;;  %v959_v41 = vmul.f32 %v2372_v47, %v2501_v20 }
  0xae   : > { %v1074_v31 = vsel %vm368_vm0, %v1071_v35, %v1073_v54  ;;  %v1215_v33 = vsel %vm510_vm1, %v1212_v37, %v1214_v11  ;;  %v312_v1 = vmul.f32 %v2320_v19, %v2289_v32  ;;  %v341_v16 = vmul.f32 %v2330_v30, %v2289_v32 }
  0xaf   : > { %v1318_v56 = vmul.f32 0.2, %v1294_v58  ;;  %v788_v18 = vadd.f32 %v739_v9, %v647_v17  ;;  %v595_v39 = vadd.f32 %v544_v25, %v453_v49  ;;  %v2534_v22 = vmul.f32 %v2330_v30, %v2296_v63 }
  0xb0   : > { %v404_v29 = vrot.slane %v341_v16, 1  ;;  %v483_v35 = vmul.f32 %v2338_v14, %v2289_v32  ;;  %v2540_v37 = vmul.f32 %v2338_v14, %v2296_v63  ;;  %v625_v61 = vmul.f32 %v2345_v13, %v2452_v3 }
  0xb1   : > { %v1342_v60 = vmax.f32 %v1294_v58, %v1318_v56  ;;  %v929_v40 = vadd.f32 %v880_v38, %v788_v18  ;;  %v648_v62 = vadd.f32 %v624_v27, %v595_v39  ;;  %v405_v52 = vrot.slane %v2534_v22, 1 }
  0xb2   : > { %v546_v55 = vrot.slane %v483_v35, 2  ;;  %v547_v34 = vrot.slane %v2540_v37, 2  ;;  %v678_v50 = vmul.f32 %v2353_v51, %v2452_v3  ;;  %v2550_v32 = vmul.f32 %v2353_v51, %v2457_v24 }
  0xb3   : > { %1366 = vst [vmem:[%s1880_s5 + $0x90] sm:$0xff] %v1342_v60  ;;  %v982_v43 = vadd.f32 %v958_v26, %v929_v40  ;;  %v789_v5 = vadd.f32 %v738_v0, %v648_v62  ;;  %v406_v6 = vsel %vm368_vm0, %v404_v29, %v405_v52  ;;  %v819_v25 = vmul.f32 %v2363_v12, %v2452_v3 }
  0xb4   : > { %v454_v44 = vadd.f32 %v406_v6, %v312_v1  ;;  %v548_v28 = vsel %vm510_vm1, %v546_v55, %v547_v34  ;;  %v740_v46 = vrot.slane %v678_v50, 1  ;;  %v741_v10 = vrot.slane %v2550_v32, 1  ;;  %v285_v55 = vld [vmem:[%s1701_s30 + $0xe8] sm:$0x3f] }
  0xb5   : > { %v1123_v8 = vadd.f32 %v1074_v31, %v982_v43  ;;  %v930_v9 = vadd.f32 %v879_v45, %v789_v5  ;;  %v820_v26 = vmul.f32 %v2363_v12, %v2457_v24  ;;  %v881_v0 = vrot.slane %v819_v25, 2 }
  0xb6   : > { %v596_v23 = vadd.f32 %v548_v28, %v454_v44  ;;  %v742_v48 = vsel %vm368_vm0, %v740_v46, %v741_v10  ;;  %v1013_v21 = vmul.f32 %v2383_v4, %v283_v42  ;;  %v1014_v53 = vmul.f32 %v2383_v4, %v2558_v7 }
  0xb7   : > { %v1264_v3 = vadd.f32 %v1215_v33, %v1123_v8  ;;  %v983_v15 = vadd.f32 %v959_v41, %v930_v9  ;;  %v882_v2 = vrot.slane %v820_v26, 2  ;;  %v1154_v58 = vmul.f32 %v2400_v57, %v283_v42 }
  0xb8   : > { %v649_v38 = vadd.f32 %v625_v61, %v596_v23  ;;  %v1075_v27 = vrot.slane %v1013_v21, 1  ;;  %v2571_v45 = vmul.f32 %v2400_v57, %v2558_v7  ;;  %v1076_v1 = vrot.slane %v1014_v53, 1 }
  0xb9   : > { %v1295_v17 = vadd.f32 %v2474_v36, %v1264_v3  ;;  %v1124_v49 = vadd.f32 %v1073_v54, %v983_v15  ;;  %v883_v31 = vsel %vm510_vm1, %v881_v0, %v882_v2  ;;  %v960_v41 = vmul.f32 %v2372_v47, %v283_v42 }
  0xba   : > { %v790_v33 = vadd.f32 %v742_v48, %v649_v38  ;;  %v1216_v16 = vrot.slane %v1154_v58, 2  ;;  %v1217_v39 = vrot.slane %v2571_v45, 2  ;;  %v343_v22 = vmul.f32 %v2330_v30, %v2358_v59 }
  0xbb   : > { %v1319_v56 = vmul.f32 0.2, %v1295_v17  ;;  %v1265_v18 = vadd.f32 %v1214_v11, %v1124_v49  ;;  %v1077_v35 = vsel %vm368_vm0, %v1075_v27, %v1076_v1  ;;  %v313_v54 = vmul.f32 %v2320_v19, %v2296_v63 }
  0xbc   : > { %v931_v29 = vadd.f32 %v883_v31, %v790_v33  ;;  %v485_v37 = vmul.f32 %v2338_v14, %v2358_v59  ;;  %v407_v40 = vrot.slane %v343_v22, 1  ;;  %v680_v11 = vmul.f32 %v2353_v51, %v2501_v20 }
  0xbd   : > { %v1343_v61 = vmax.f32 %v1295_v17, %v1319_v56  ;;  %v1296_v60 = vadd.f32 %v2474_v36, %v1265_v18  ;;  %v821_v30 = vmul.f32 %v2363_v12, %v2501_v20  ;;  %v1218_v63 = vsel %vm510_vm1, %v1216_v16, %v1217_v39 }
  0xbe   : > { %v984_v62 = vadd.f32 %v960_v41, %v931_v29  ;;  %v549_v50 = vrot.slane %v485_v37, 2  ;;  %v408_v14 = vsel %vm368_vm0, %v405_v52, %v407_v40  ;;  %v743_v43 = vrot.slane %v680_v11, 1 }
  0xbf   : > { %1367 = vst [vmem:[%s1880_s5 + $0x98] sm:$0xff] %v1343_v61  ;;  %v1320_v32 = vmul.f32 0.2, %v1296_v60  ;;  %v455_v42 = vadd.f32 %v408_v14, %v313_v54  ;;  %v626_v51 = vmul.f32 %v2345_v13, %v2457_v24  ;;  %v884_v44 = vrot.slane %v821_v30, 2 }
  0xc0   : > { %v1125_v5 = vadd.f32 %v1077_v35, %v984_v62  ;;  %v550_v6 = vsel %vm510_vm1, %v547_v34, %v549_v50  ;;  %v1015_v28 = vmul.f32 %v2383_v4, %v285_v55  ;;  %v314_v8 = vmul.f32 %v2320_v19, %v2358_v59 }
  0xc1   : > { %v1344_v25 = vmax.f32 %v1296_v60, %v1320_v32  ;;  %v597_v46 = vadd.f32 %v550_v6, %v455_v42  ;;  %v744_v52 = vsel %vm368_vm0, %v741_v10, %v743_v43  ;;  %v1156_v9 = vmul.f32 %v2400_v57, %v285_v55 }
  0xc2   : > { %v1266_v12 = vadd.f32 %v1218_v63, %v1125_v5  ;;  %v456_v0 = vadd.f32 %v407_v40, %v314_v8  ;;  %v627_v24 = vmul.f32 %v2345_v13, %v2501_v20  ;;  %v885_v4 = vsel %vm510_vm1, %v882_v2, %v884_v44 }
  0xc3   : > { %1368 = vst [vmem:[%s1880_s5 + $0xa0] sm:$0xf] %v1344_v25  ;;  %v650_v26 = vadd.f32 %v626_v51, %v597_v46  ;;  %v1078_v23 = vrot.slane %v1015_v28, 1  ;;  %v961_v19 = vmul.f32 %v2372_v47, %v2558_v7  ;;  %v1219_v10 = vrot.slane %v1156_v9, 2 }
  0xc4   : > { %v1297_v34 = vadd.f32 %v2474_v36, %v1266_v12  ;;  %v598_v59 = vadd.f32 %v549_v50, %v456_v0  ;;  %v962_v13 = vmul.f32 %v2372_v47, %v285_v55 }
  0xc5   : > { %v791_v21 = vadd.f32 %v744_v52, %v650_v26  ;;  %v1079_v53 = vsel %vm368_vm0, %v1076_v1, %v1078_v23  ;;  %v1220_v20 = vsel %vm510_vm1, %v1217_v39, %v1219_v10 }
  0xc6   : > { %v1321_v48 = vmul.f32 0.2, %v1297_v34  ;;  %v651_v15 = vadd.f32 %v627_v24, %v598_v59 }
  0xc7   : > { %v932_v57 = vadd.f32 %v885_v4, %v791_v21 }
  0xc8   : > { %v1345_v3 = vmax.f32 %v1297_v34, %v1321_v48  ;;  %v792_v27 = vadd.f32 %v743_v43, %v651_v15 }
  0xc9   : > { %v985_v38 = vadd.f32 %v961_v19, %v932_v57 }
  0xca   : > { %1369 = vst [vmem:[%s1880_s5 + $0xa8] sm:$0xff] %v1345_v3  ;;  %v933_v58 = vadd.f32 %v884_v44, %v792_v27 }
  0xcb   : > { %v1126_v2 = vadd.f32 %v1079_v53, %v985_v38 }
  0xcc   : > { %v986_v7 = vadd.f32 %v962_v13, %v933_v58 }
  0xcd   : > { %v1267_v45 = vadd.f32 %v1220_v20, %v1126_v2 }
  0xce   : > { %v1127_v49 = vadd.f32 %v1078_v23, %v986_v7 }
  0xcf   : > { %v1298_v17 = vadd.f32 %v2474_v36, %v1267_v45 }
  0xd0   : > { %v1268_v33 = vadd.f32 %v1219_v10, %v1127_v49 }
  0xd1   : > { %v1322_v31 = vmul.f32 0.2, %v1298_v17 }
  0xd2   : > { %v1299_v1 = vadd.f32 %v2474_v36, %v1268_v33 }
  0xd3   : > { %v1346_v41 = vmax.f32 %v1298_v17, %v1322_v31 }
  0xd4   : > { %v1323_v16 = vmul.f32 0.2, %v1299_v1 }
  0xd5   : > { %1370 = vst [vmem:[%s1880_s5 + $0xb0] sm:$0xff] %v1346_v41 }
  0xd6   : > { %v1347_v56 = vmax.f32 %v1299_v1, %v1323_v16 }
  0xd8   : > { %1371 = vst [vmem:[%s1880_s5 + $0xb8] sm:$0xf] %v1347_v56 }
  0xd9 PF: > { %s13_s16 = sadd.s32 1, %s1625_s16   ;;  %s2636_s12 = smov %s1617_s14 }
  0xda   : > { %p10_p7 = scmp.ge.s32.totalorder %s13_s16, 8   ;;  %s2637_s13 = smov %s1621_s15 }
  0xdb   : > { %s2638_s14 = smov %s2641_s17  ;;  %s2639_s15 = smov %s2645_s18 }
  0xdc   :  { %12 = sbr.rel (!%p10_p7) target bundleno = 3 (0x3), region = 69 }

</bundles_post_ra>
